<compile_context>
chip_gen: v5e
topology: v5e:2x2
jax: 0.10.0
libtpu: 0.0.40
codegen_flags: <defaults>
</compile_context>

<pallas_src>
import functools

import jax
import jax.numpy as jnp
from jax.experimental import pallas as pl
from jax.experimental.pallas import tpu as pltpu

EPS = 1e-5
HIDDEN = 512          # fixed by the module definition (lin1 out_features)


def _round_up(n, m):
    return ((n + m - 1) // m) * m


# ---------------------------------------------------------------------------
# Kernel: one batch tile ->  (x @ w1 + b1) -> Mish -> (@ w2 + b2)
# BN1/BN2 and eval-mode dropout are folded into w1/b1/w2/b2 offline.
# ---------------------------------------------------------------------------
def headv2_kernel(x_ref, w1_ref, b1_ref, w2_ref, b2_ref, o_ref, *, bf16_mish):
    # lin1: bf16 operands (x already bf16 in HBM), f32 accumulation on the MXU.
    h = jnp.dot(x_ref[...], w1_ref[...],
                preferred_element_type=jnp.float32) + b1_ref[...]

    # Mish: h * tanh(softplus(h)) with
    #   tanh(softplus(h)) = t*(t+2) / (t*(t+2) + 2),  t = e^h
    # -> one EUP exp + one reciprocal/div; adds/muls ride VALU slots.
    if bf16_mish:
        # bf16 element-wise path (v6e / v7x: bf16 VPU+EUP) -- packed vregs
        # halve the op count on the saturating VALU/EUP slots; accuracy is
        # already bounded by the bf16 MXU operands.
        hb = h.astype(jnp.bfloat16)
        t = jnp.exp(jnp.minimum(hb, 20.0))
        num = t * (t + 2.0)
        tsp = num / (num + 2.0)
        act = jnp.where(hb > 20.0, hb, hb * tsp)      # bf16, feeds MXU directly
    else:
        # f32 element-wise path (v5e and unknown gens: no bf16 VPU/EUP).
        t = jnp.exp(jnp.minimum(h, 20.0))
        num = t * (t + 2.0)
        tsp = num * pl.reciprocal(num + 2.0, approx=True)
        act = jnp.where(h > 20.0, h, h * tsp).astype(jnp.bfloat16)

    # lin2 (BN2 + eval-dropout folded into w2/b2).
    out = jnp.dot(act, w2_ref[...],
                  preferred_element_type=jnp.float32) + b2_ref[...]
    o_ref[...] = out.astype(o_ref.dtype)


# ---------------------------------------------------------------------------
# Generation detection (VMEM budget, bf16 element-wise support, #TensorCores)
# ---------------------------------------------------------------------------
def _tpu_generation():
    try:
        kind = jax.devices()[0].device_kind.lower()
    except Exception:
        kind = ""
    if "v6" in kind:          # v6e: 128 MiB VMEM, bf16 VPU/EUP, 1 TC
        return dict(name="v6e", bf16_ew=True, num_tc=1,
                    budget=80 << 20, vmem_limit=96 << 20)
    if "7" in kind:           # v7x: 64 MiB VMEM, bf16 VPU/EUP, 2 TCs
        return dict(name="v7x", bf16_ew=True, num_tc=2,
                    budget=36 << 20, vmem_limit=48 << 20)
    if "v5" in kind:          # v5e/v5p: 128 MiB VMEM, no bf16 VPU/EUP
        return dict(name="v5", bf16_ew=False, num_tc=1,
                    budget=80 << 20, vmem_limit=96 << 20)
    # Unknown / older generations: conservative budget, f32 element-wise math,
    # leave the compiler's default scoped VMEM limit alone.
    return dict(name="other", bf16_ew=False, num_tc=1,
                budget=12 << 20, vmem_limit=None)


# ---------------------------------------------------------------------------
# VMEM budgeting / batch-tile selection
# ---------------------------------------------------------------------------
def _vmem_bytes(block_b, inp, outp_p):
    x_b = 2 * block_b * inp * 2                      # double-buffered bf16 x tile
    o_b = 2 * block_b * outp_p * 4                   # double-buffered f32 out tile
    w_b = 2 * (inp * HIDDEN + HIDDEN * outp_p) * 2   # bf16 weights (worst case 2 bufs)
    bias_b = 2 * (HIDDEN + outp_p) * 4
    h_b = 4 * block_b * HIDDEN * 4                   # h + Mish temporaries (headroom)
    return x_b + o_b + w_b + bias_b + h_b


_CANDIDATE_BLOCKS = (1024, 768, 512, 384, 256, 192, 128, 96, 64, 48, 32, 16)


def _choose_block_b(batch, inp, outp_p, budget, num_tc):
    b16 = _round_up(batch, 16)
    cap = b16
    if num_tc >= 2 and b16 >= 32:
        # >= 2 "parallel" grid steps so both TensorCores get work (v7x).
        cap = min(cap, _round_up((b16 + 1) // 2, 16))
    cands = [c for c in _CANDIDATE_BLOCKS
             if c <= cap and _vmem_bytes(c, inp, outp_p) <= budget]
    if not cands:
        # TODO(synk): very large inp/outp would need a K/N grid axis with an
        # f32 accumulator; not needed at these head sizes.
        return 16

    def waste(c):
        return _round_up(batch, c) - batch

    # Largest tile whose batch padding is <= 1/8 of the padded batch; else the
    # minimum-waste candidate (tie-break: larger tile -> fewer grid steps).
    good = [c for c in cands if 8 * waste(c) <= _round_up(batch, c)]
    if good:
        return max(good)
    return min(cands, key=lambda c: (waste(c), -c))


# ---------------------------------------------------------------------------
# Parameter preparation: fold BN1/BN2 into the Linears, pad outp lanes,
# cast weights to bf16.  Done once, outside the per-forward path.
# ---------------------------------------------------------------------------
def fold_params(p):
    s1 = p["g1"] * jax.lax.rsqrt(p["v1"] + EPS)                     # (inp,)
    w1f = p["w1"] * s1[:, None]                                     # (inp, 512)
    b1f = p["bias1"] + (p["b1"] - p["m1"] * s1) @ p["w1"]           # (512,)
    s2 = p["g2"] * jax.lax.rsqrt(p["v2"] + EPS)                     # (512,)
    w2f = p["w2"] * s2[:, None]                                     # (512, outp)
    b2f = p["bias2"] + (p["b2"] - p["m2"] * s2) @ p["w2"]           # (outp,)
    return w1f, b1f, w2f, b2f


def prepare_params(p, gen=None):
    w1f, b1f, w2f, b2f = fold_params(p)
    inp = w1f.shape[0]
    outp = w2f.shape[1]
    outp_p = _round_up(outp, 128)      # lane-dense (unmasked) output stores
    if gen is None:
        gen = _tpu_generation()
    return {
        "inp": inp, "outp": outp, "outp_p": outp_p, "gen": gen,
        "w1": w1f.astype(jnp.bfloat16),                              # (inp, 512)
        "b1": b1f.reshape(1, HIDDEN).astype(jnp.float32),
        "w2": jnp.pad(w2f, ((0, 0), (0, outp_p - outp))).astype(jnp.bfloat16),
        "b2": jnp.pad(b2f.reshape(1, outp),
                      ((0, 0), (0, outp_p - outp))).astype(jnp.float32),
    }


# ---------------------------------------------------------------------------
# Forward wrapper
# ---------------------------------------------------------------------------
def headv2_forward(x, prep, *, block_b=None, single_buffer_weights=None,
                   out_dtype=None):
    B, inp = x.shape
    assert inp == prep["inp"]
    outp, outp_p = prep["outp"], prep["outp_p"]
    gen = prep["gen"]
    out_dtype = out_dtype or x.dtype     # pass bf16 here on v5e to halve the store stream

    if block_b is None:
        block_b = _choose_block_b(B, inp, outp_p, gen["budget"], gen["num_tc"])
    block_b = max(16, _round_up(block_b, 16))
    B_pad = _round_up(B, block_b)

    # bf16 x (halves the dominant HBM stream); batch-row zero-pad only -- the
    # feature (K) axis is deliberately NOT lane-padded: a full-extent last dim
    # is a legal block and padding K would multiply the x read for small inp.
    x_p = x.astype(jnp.bfloat16)
    if B_pad != B:
        x_p = jnp.pad(x_p, ((0, B_pad - B), (0, 0)))

    grid = (B_pad // block_b,)
    kernel = functools.partial(headv2_kernel, bf16_mish=gen["bf16_ew"])

    def build(single_buf):
        # Constant-index weights/biases are fetched once; single-buffer them
        # to reclaim VMEM (matters for large inp under v7x's 64 MiB).
        wmode = {"pipeline_mode": pl.Buffered(1)} if single_buf else {}
        in_specs = [
            pl.BlockSpec((block_b, inp), lambda i: (i, 0)),            # x tile (bf16)
            pl.BlockSpec((inp, HIDDEN), lambda i: (0, 0), **wmode),    # w1 (folded)
            pl.BlockSpec((1, HIDDEN), lambda i: (0, 0), **wmode),      # b1 (folded)
            pl.BlockSpec((HIDDEN, outp_p), lambda i: (0, 0), **wmode), # w2 (folded)
            pl.BlockSpec((1, outp_p), lambda i: (0, 0), **wmode),      # b2 (folded)
        ]
        out_spec = pl.BlockSpec((block_b, outp_p), lambda i: (i, 0))
        return pl.pallas_call(
            kernel,
            out_shape=jax.ShapeDtypeStruct((B_pad, outp_p), out_dtype),
            grid_spec=pltpu.PrefetchScalarGridSpec(
                num_scalar_prefetch=0,
                grid=grid,
                in_specs=in_specs,
                out_specs=out_spec,
            ),
            compiler_params=pltpu.CompilerParams(
                dimension_semantics=("parallel",),
                vmem_limit_bytes=gen["vmem_limit"],
            ),
        )

    args = (x_p, prep["w1"], prep["b1"], prep["w2"], prep["b2"])
    if single_buffer_weights is None:
        # Try single-buffered weights; fall back to default double buffering
        # if this jax version rejects Buffered(1).  (Jitted callers should
        # pass single_buffer_weights explicitly.)
        try:
            out_pad = build(True)(*args)
        except Exception:
            out_pad = build(False)(*args)
    else:
        out_pad = build(single_buffer_weights)(*args)

    return out_pad[:B, :outp]


# ---------------------------------------------------------------------------
# Parameter init (PyTorch-like Linear init; BN params randomized so the
# folding path is actually exercised) and a pure-JAX f32 reference of the
# original, un-folded eval-mode forward.
# ---------------------------------------------------------------------------
def init_params(key, inp, outp):
    ks = jax.random.split(key, 12)
    lim1 = 1.0 / jnp.sqrt(inp)
    lim2 = 1.0 / jnp.sqrt(HIDDEN)
    return {
        "g1": 1.0 + 0.1 * jax.random.normal(ks[0], (inp,), jnp.float32),
        "b1": 0.1 * jax.random.normal(ks[1], (inp,), jnp.float32),
        "m1": 0.1 * jax.random.normal(ks[2], (inp,), jnp.float32),
        "v1": jax.random.uniform(ks[3], (inp,), jnp.float32, 0.5, 1.5),
        "w1": jax.random.uniform(ks[4], (inp, HIDDEN), jnp.float32, -lim1, lim1),
        "bias1": jax.random.uniform(ks[5], (HIDDEN,), jnp.float32, -lim1, lim1),
        "g2": 1.0 + 0.1 * jax.random.normal(ks[6], (HIDDEN,), jnp.float32),
        "b2": 0.1 * jax.random.normal(ks[7], (HIDDEN,), jnp.float32),
        "m2": 0.1 * jax.random.normal(ks[8], (HIDDEN,), jnp.float32),
        "v2": jax.random.uniform(ks[9], (HIDDEN,), jnp.float32, 0.5, 1.5),
        "w2": jax.random.uniform(ks[10], (HIDDEN, outp), jnp.float32, -lim2, lim2),
        "bias2": jax.random.uniform(ks[11], (outp,), jnp.float32, -lim2, lim2),
    }


def reference_forward(x, p):
    """Original-semantics eval-mode forward in f32 (BN -> drop -> lin -> Mish
    -> BN -> drop -> lin)."""
    h = (x - p["m1"]) * jax.lax.rsqrt(p["v1"] + EPS) * p["g1"] + p["b1"]
    h = h @ p["w1"] + p["bias1"]
    sp = jnp.maximum(h, 0.0) + jnp.log1p(jnp.exp(-jnp.abs(h)))
    h = h * jnp.tanh(sp)
    h = (h - p["m2"]) * jax.lax.rsqrt(p["v2"] + EPS) * p["g2"] + p["b2"]
    return h @ p["w2"] + p["bias2"]


# TODO(synk): training-mode dropout and BatchNorm batch-statistic updates are
# intentionally not implemented (eval/inference semantics only).

if __name__ == "__main__":
    key = jax.random.PRNGKey(0)
    kx, kp = jax.random.split(key)

    batch, inp, outp = 8, 32, 16
    x = jax.random.normal(kx, (batch, inp), dtype=jnp.float32)
    params = init_params(kp, inp, outp)
    prep = prepare_params(params)

    out = headv2_forward(x, prep)
    out = jax.block_until_ready(out)

    ref = reference_forward(x, params)
    assert out.shape == (batch, outp)
    # bf16 MXU operands (+ bf16 element-wise Mish on v6e/v7x) bound end-to-end
    # accuracy to roughly the 1e-2 relative level -- intentional.
    err = float(jnp.max(jnp.abs(out - ref)))
    assert jnp.allclose(out, ref, atol=5e-2, rtol=3e-2), err

    print("KERNEL_OK")
</pallas_src>

<mosaic_0001>
module attributes {stable_mosaic.version = 11 : i64} {
  func.func @headv2_kernel(%arg0: i32, %arg1: memref<16x32xbf16, #tpu.memory_space<vmem>>, %arg2: memref<32x512xbf16, #tpu.memory_space<vmem>>, %arg3: memref<1x512xf32, #tpu.memory_space<vmem>>, %arg4: memref<512x128xbf16, #tpu.memory_space<vmem>>, %arg5: memref<1x128xf32, #tpu.memory_space<vmem>>, %arg6: memref<16x128xf32, #tpu.memory_space<vmem>>) attributes {dimension_semantics = [#tpu.dimension_semantics<parallel>], iteration_bounds = array<i64: 1>, scalar_prefetch = 0 : i64, scratch_operands = 0 : i64, tpu.core_type = #tpu.core_type<tc>, window_params = [{transform_indices = @transform_0, window_bounds = array<i64: 16, 32>}, {pipeline_mode = #tpu.pipeline_mode<synchronous>, transform_indices = @transform_1, window_bounds = array<i64: 32, 512>}, {pipeline_mode = #tpu.pipeline_mode<synchronous>, transform_indices = @transform_2, window_bounds = array<i64: 1, 512>}, {pipeline_mode = #tpu.pipeline_mode<synchronous>, transform_indices = @transform_3, window_bounds = array<i64: 512, 128>}, {pipeline_mode = #tpu.pipeline_mode<synchronous>, transform_indices = @transform_4, window_bounds = array<i64: 1, 128>}, {transform_indices = @transform_5, window_bounds = array<i64: 16, 128>}]} {
    %c0 = arith.constant 0 : index
    %c0_0 = arith.constant 0 : index
    %0 = vector.load %arg1[%c0, %c0_0] : memref<16x32xbf16, #tpu.memory_space<vmem>>, vector<16x32xbf16>
    %c0_1 = arith.constant 0 : index
    %c0_2 = arith.constant 0 : index
    %1 = vector.load %arg2[%c0_1, %c0_2] : memref<32x512xbf16, #tpu.memory_space<vmem>>, vector<32x512xbf16>
    %cst = arith.constant dense<0.000000e+00> : vector<16x512xf32>
    %2 = tpu.matmul %0, %1, %cst {dimension_numbers = #tpu.dot_dimension_numbers<[1], [0], [0], [1], [0, 0, 1, 1], [], []>} : vector<16x32xbf16>, vector<32x512xbf16>, vector<16x512xf32> -> vector<16x512xf32>
    %c0_3 = arith.constant 0 : index
    %c0_4 = arith.constant 0 : index
    %3 = vector.load %arg3[%c0_3, %c0_4] : memref<1x512xf32, #tpu.memory_space<vmem>>, vector<1x512xf32>
    %4 = vector.broadcast %3 : vector<1x512xf32> to vector<16x512xf32>
    %5 = arith.addf %2, %4 : vector<16x512xf32>
    %cst_5 = arith.constant 2.000000e+01 : f32
    %6 = vector.broadcast %cst_5 : f32 to vector<16x512xf32>
    %7 = arith.minimumf %5, %6 : vector<16x512xf32>
    %8 = math.exp %7 : vector<16x512xf32>
    %cst_6 = arith.constant 2.000000e+00 : f32
    %9 = vector.broadcast %cst_6 : f32 to vector<16x512xf32>
    %10 = arith.addf %8, %9 : vector<16x512xf32>
    %11 = arith.mulf %8, %10 : vector<16x512xf32>
    %cst_7 = arith.constant 2.000000e+00 : f32
    %12 = vector.broadcast %cst_7 : f32 to vector<16x512xf32>
    %13 = arith.addf %11, %12 : vector<16x512xf32>
    %14 = tpu.reciprocal %13 {approx = true} : vector<16x512xf32> -> vector<16x512xf32>
    %15 = arith.mulf %11, %14 : vector<16x512xf32>
    %cst_8 = arith.constant 2.000000e+01 : f32
    %16 = vector.broadcast %cst_8 : f32 to vector<16x512xf32>
    %17 = arith.cmpf ogt, %5, %16 : vector<16x512xf32>
    %18 = arith.mulf %5, %15 : vector<16x512xf32>
    %19 = arith.select %17, %5, %18 : vector<16x512xi1>, vector<16x512xf32>
    %20 = arith.truncf %19 : vector<16x512xf32> to vector<16x512xbf16>
    %c0_9 = arith.constant 0 : index
    %c0_10 = arith.constant 0 : index
    %21 = vector.load %arg4[%c0_9, %c0_10] : memref<512x128xbf16, #tpu.memory_space<vmem>>, vector<512x128xbf16>
    %cst_11 = arith.constant dense<0.000000e+00> : vector<16x128xf32>
    %22 = tpu.matmul %20, %21, %cst_11 {dimension_numbers = #tpu.dot_dimension_numbers<[1], [0], [0], [1], [0, 0, 1, 1], [], []>} : vector<16x512xbf16>, vector<512x128xbf16>, vector<16x128xf32> -> vector<16x128xf32>
    %c0_12 = arith.constant 0 : index
    %c0_13 = arith.constant 0 : index
    %23 = vector.load %arg5[%c0_12, %c0_13] : memref<1x128xf32, #tpu.memory_space<vmem>>, vector<1x128xf32>
    %24 = vector.broadcast %23 : vector<1x128xf32> to vector<16x128xf32>
    %25 = arith.addf %22, %24 : vector<16x128xf32>
    %c0_14 = arith.constant 0 : index
    %c0_15 = arith.constant 0 : index
    %26 = vector.load %arg6[%c0_14, %c0_15] : memref<16x128xf32, #tpu.memory_space<vmem>>, vector<16x128xf32>
    tpu.vector_store %arg6[%c0_14, %c0_15], %25 {strides = array<i32>} : memref<16x128xf32, #tpu.memory_space<vmem>>, vector<16x128xf32>,
    return
  }
  func.func @transform_0(%arg0: i32) -> (i32, i32) {
    %c0_i32 = arith.constant 0 : i32
    %c0_i32_0 = arith.constant 0 : i32
    return %arg0, %c0_i32 : i32, i32
  }
  func.func @transform_1(%arg0: i32) -> (i32, i32) {
    %c0_i32 = arith.constant 0 : i32
    %c0_i32_0 = arith.constant 0 : i32
    %c0_i32_1 = arith.constant 0 : i32
    return %c0_i32, %c0_i32_0 : i32, i32
  }
  func.func @transform_2(%arg0: i32) -> (i32, i32) {
    %c0_i32 = arith.constant 0 : i32
    %c0_i32_0 = arith.constant 0 : i32
    %c0_i32_1 = arith.constant 0 : i32
    return %c0_i32, %c0_i32_0 : i32, i32
  }
  func.func @transform_3(%arg0: i32) -> (i32, i32) {
    %c0_i32 = arith.constant 0 : i32
    %c0_i32_0 = arith.constant 0 : i32
    %c0_i32_1 = arith.constant 0 : i32
    return %c0_i32, %c0_i32_0 : i32, i32
  }
  func.func @transform_4(%arg0: i32) -> (i32, i32) {
    %c0_i32 = arith.constant 0 : i32
    %c0_i32_0 = arith.constant 0 : i32
    %c0_i32_1 = arith.constant 0 : i32
    return %c0_i32, %c0_i32_0 : i32, i32
  }
  func.func @transform_5(%arg0: i32) -> (i32, i32) {
    %c0_i32 = arith.constant 0 : i32
    %c0_i32_0 = arith.constant 0 : i32
    return %arg0, %c0_i32 : i32, i32
  }
}

module attributes {stable_mosaic.version = 11 : i64} {
  func.func @headv2_kernel(%arg0: i32, %arg1: memref<16x32xbf16, #tpu.memory_space<vmem>>, %arg2: memref<32x512xbf16, #tpu.memory_space<vmem>>, %arg3: memref<1x512xf32, #tpu.memory_space<vmem>>, %arg4: memref<512x128xbf16, #tpu.memory_space<vmem>>, %arg5: memref<1x128xf32, #tpu.memory_space<vmem>>, %arg6: memref<16x128xf32, #tpu.memory_space<vmem>>) attributes {dimension_semantics = [#tpu.dimension_semantics<parallel>], iteration_bounds = array<i64: 1>, scalar_prefetch = 0 : i64, scratch_operands = 0 : i64, tpu.core_type = #tpu.core_type<tc>, window_params = [{transform_indices = @transform_0, window_bounds = array<i64: 16, 32>}, {pipeline_mode = #tpu.pipeline_mode<synchronous>, transform_indices = @transform_1, window_bounds = array<i64: 32, 512>}, {pipeline_mode = #tpu.pipeline_mode<synchronous>, transform_indices = @transform_2, window_bounds = array<i64: 1, 512>}, {pipeline_mode = #tpu.pipeline_mode<synchronous>, transform_indices = @transform_3, window_bounds = array<i64: 512, 128>}, {pipeline_mode = #tpu.pipeline_mode<synchronous>, transform_indices = @transform_4, window_bounds = array<i64: 1, 128>}, {transform_indices = @transform_5, window_bounds = array<i64: 16, 128>}]} {
    %c0 = arith.constant 0 : index
    %c0_0 = arith.constant 0 : index
    %0 = vector.load %arg1[%c0, %c0_0] : memref<16x32xbf16, #tpu.memory_space<vmem>>, vector<16x32xbf16>
    %c0_1 = arith.constant 0 : index
    %c0_2 = arith.constant 0 : index
    %1 = vector.load %arg2[%c0_1, %c0_2] : memref<32x512xbf16, #tpu.memory_space<vmem>>, vector<32x512xbf16>
    %cst = arith.constant dense<0.000000e+00> : vector<16x512xf32>
    %2 = tpu.matmul %0, %1, %cst {dimension_numbers = #tpu.dot_dimension_numbers<[1], [0], [0], [1], [0, 0, 1, 1], [], []>} : vector<16x32xbf16>, vector<32x512xbf16>, vector<16x512xf32> -> vector<16x512xf32>
    %c0_3 = arith.constant 0 : index
    %c0_4 = arith.constant 0 : index
    %3 = vector.load %arg3[%c0_3, %c0_4] : memref<1x512xf32, #tpu.memory_space<vmem>>, vector<1x512xf32>
    %4 = vector.broadcast %3 : vector<1x512xf32> to vector<16x512xf32>
    %5 = arith.addf %2, %4 : vector<16x512xf32>
    %cst_5 = arith.constant 2.000000e+01 : f32
    %6 = vector.broadcast %cst_5 : f32 to vector<16x512xf32>
    %7 = arith.minimumf %5, %6 : vector<16x512xf32>
    %8 = math.exp %7 : vector<16x512xf32>
    %cst_6 = arith.constant 2.000000e+00 : f32
    %9 = vector.broadcast %cst_6 : f32 to vector<16x512xf32>
    %10 = arith.addf %8, %9 : vector<16x512xf32>
    %11 = arith.mulf %8, %10 : vector<16x512xf32>
    %cst_7 = arith.constant 2.000000e+00 : f32
    %12 = vector.broadcast %cst_7 : f32 to vector<16x512xf32>
    %13 = arith.addf %11, %12 : vector<16x512xf32>
    %14 = tpu.reciprocal %13 {approx = true} : vector<16x512xf32> -> vector<16x512xf32>
    %15 = arith.mulf %11, %14 : vector<16x512xf32>
    %cst_8 = arith.constant 2.000000e+01 : f32
    %16 = vector.broadcast %cst_8 : f32 to vector<16x512xf32>
    %17 = arith.cmpf ogt, %5, %16 : vector<16x512xf32>
    %18 = arith.mulf %5, %15 : vector<16x512xf32>
    %19 = arith.select %17, %5, %18 : vector<16x512xi1>, vector<16x512xf32>
    %20 = arith.truncf %19 : vector<16x512xf32> to vector<16x512xbf16>
    %c0_9 = arith.constant 0 : index
    %c0_10 = arith.constant 0 : index
    %21 = vector.load %arg4[%c0_9, %c0_10] : memref<512x128xbf16, #tpu.memory_space<vmem>>, vector<512x128xbf16>
    %cst_11 = arith.constant dense<0.000000e+00> : vector<16x128xf32>
    %22 = tpu.matmul %20, %21, %cst_11 {dimension_numbers = #tpu.dot_dimension_numbers<[1], [0], [0], [1], [0, 0, 1, 1], [], []>} : vector<16x512xbf16>, vector<512x128xbf16>, vector<16x128xf32> -> vector<16x128xf32>
    %c0_12 = arith.constant 0 : index
    %c0_13 = arith.constant 0 : index
    %23 = vector.load %arg5[%c0_12, %c0_13] : memref<1x128xf32, #tpu.memory_space<vmem>>, vector<1x128xf32>
    %24 = vector.broadcast %23 : vector<1x128xf32> to vector<16x128xf32>
    %25 = arith.addf %22, %24 : vector<16x128xf32>
    %c0_14 = arith.constant 0 : index
    %c0_15 = arith.constant 0 : index
    %26 = vector.load %arg6[%c0_14, %c0_15] : memref<16x128xf32, #tpu.memory_space<vmem>>, vector<16x128xf32>
    tpu.vector_store %arg6[%c0_14, %c0_15], %25 {strides = array<i32>} : memref<16x128xf32, #tpu.memory_space<vmem>>, vector<16x128xf32>,
    return
  }
  func.func @transform_0(%arg0: i32) -> (i32, i32) {
    %c0_i32 = arith.constant 0 : i32
    %c0_i32_0 = arith.constant 0 : i32
    return %arg0, %c0_i32 : i32, i32
  }
  func.func @transform_1(%arg0: i32) -> (i32, i32) {
    %c0_i32 = arith.constant 0 : i32
    %c0_i32_0 = arith.constant 0 : i32
    %c0_i32_1 = arith.constant 0 : i32
    return %c0_i32, %c0_i32_0 : i32, i32
  }
  func.func @transform_2(%arg0: i32) -> (i32, i32) {
    %c0_i32 = arith.constant 0 : i32
    %c0_i32_0 = arith.constant 0 : i32
    %c0_i32_1 = arith.constant 0 : i32
    return %c0_i32, %c0_i32_0 : i32, i32
  }
  func.func @transform_3(%arg0: i32) -> (i32, i32) {
    %c0_i32 = arith.constant 0 : i32
    %c0_i32_0 = arith.constant 0 : i32
    %c0_i32_1 = arith.constant 0 : i32
    return %c0_i32, %c0_i32_0 : i32, i32
  }
  func.func @transform_4(%arg0: i32) -> (i32, i32) {
    %c0_i32 = arith.constant 0 : i32
    %c0_i32_0 = arith.constant 0 : i32
    %c0_i32_1 = arith.constant 0 : i32
    return %c0_i32, %c0_i32_0 : i32, i32
  }
  func.func @transform_5(%arg0: i32) -> (i32, i32) {
    %c0_i32 = arith.constant 0 : i32
    %c0_i32_0 = arith.constant 0 : i32
    return %arg0, %c0_i32 : i32, i32
  }
}

</mosaic_0001>

<bundles_post_ra>
// kernel: tpu_custom_call.1
= control target key start
LH: loop header
LB: loop body
LE: loop exit
PB: predicated region body
PF: predicated region fallthrough
CT: control target
= control target key end

     0   :  { %10 = vsyncpa [#allocation3], 0  ;;  %s1133_s0 = inlined_call_operand.hbm [shape: bf16[16,32], index: 0, kind: input, shape index: {}]   ;;  %s1134_s1 = inlined_call_operand.hbm [shape: bf16[32,512], index: 1, kind: input, shape index: {}]   ;;  %s1135_s2 = inlined_call_operand.hbm [shape: f32[1,512], index: 2, kind: input, shape index: {}]   ;;  %s1136_s3 = inlined_call_operand.hbm [shape: bf16[512,128], index: 3, kind: input, shape index: {}]   ;;  %s1137_s4 = inlined_call_operand.vmem [shape: f32[1,128], index: 4, kind: input, shape index: {}]   ;;  %s1138_s5 = inlined_call_operand.hbm [shape: f32[16,128], index: 5, kind: output, shape index: {}]  }
   0x1   :  { %11 = vsyncpa [#allocation6], 0 }
   0x2   :  { %12 = vsyncpa [#allocation9], 0  ;;  %s31_s20 = sshll.u32 %s1134_s1, 4  ;;  %s32_s20 = int_to_ptr.hbm [resolvable:$true] %s31_s20 }
   0x3   :  { %13 = vsyncpa [#allocation4], 0  ;;  %s1020_s21 = smov [#allocation5]   ;;  %s18_s25 = sshll.u32 %s1133_s0, 4  ;;  %s19_s25 = int_to_ptr.hbm [resolvable:$true] %s18_s25 }
   0x4   :  { %s33_s22 = sshll.u32 %s1020_s21, 4  ;;  %s1021_s26 = smov 256   ;;  %s34_s22 = int_to_ptr.vmem [resolvable:$true] %s33_s22 }
   0x5   :  { %s1022_s27 = smov 16   ;;  %s1023_s28 = smov [#allocation2]  }
   0x6   :  { %39 = dma.hbm_to_vmem [thread:$0]  %s32_s20, 1024, %s34_s22, [#allocation6], %s1021_s26, %s1021_s26, %s1022_s27  }
   0x7   :  { %s20_s29 = sshll.u32 %s1023_s28, 4  ;;  %s1024_s30 = smov 64   ;;  %s21_s29 = int_to_ptr.vmem [resolvable:$true] %s20_s29 }
   0x8   :  { %s1025_s6 = smov 4   ;;  %s45_s8 = sshll.u32 %s1135_s2, 4  ;;  %s46_s8 = int_to_ptr.hbm [resolvable:$true] %s45_s8 }
   0x9   :  { %26 = dma.hbm_to_vmem [thread:$0]  %s19_s25, 128, %s21_s29, [#allocation3], %s1024_s30, %s1024_s30, %s1025_s6  }
   0xa   :  { %s1026_s9 = smov [#allocation7]   ;;  %s55_s12 = sshll.u32 %s1136_s3, 4  ;;  %s56_s12 = int_to_ptr.hbm [resolvable:$true] %s55_s12 }
   0xb   :  { %s47_s10 = sshll.u32 %s1026_s9, 4  ;;  %s1027_s13 = smov [#allocation8]   ;;  %s48_s10 = int_to_ptr.vmem [resolvable:$true] %s47_s10 }
   0xc   :  { %50 = dma.hbm_to_vmem [thread:$0]  %s46_s8, 64, %s48_s10, [#allocation6]  }
   0xd   :  { %s57_s14 = sshll.u32 %s1027_s13, 4  ;;  %s58_s14 = int_to_ptr.vmem [resolvable:$true] %s57_s14 }
   0xe   :  { %63 = dma.hbm_to_vmem [thread:$0]  %s56_s12, 4096, %s58_s14, [#allocation9], %s1024_s30, %s1024_s30, %s1025_s6  }
   0xf   :  { %1012 = dma.done.wait [#allocation3], 128  }
  0x10   :  { %1013 = vsyncadd [#allocation3], 4294967168 }
  0x11   :  { %1014 = dma.done.wait [#allocation6], 1088  }
  0x12   :  { %1015 = vsyncadd [#allocation6], 4294966208 }
  0x13   :  { %1016 = dma.done.wait [#allocation9], 4096  }
  0x14   :  { %1017 = vsyncadd [#allocation9], 4294963200  ;;  %v661_v0 = vld [vmem:[#allocation5 + $0x20] sm:$0xf]  ;;  %v814_v1 = vld [vmem:[#allocation5 + $0x2c] sm:$0xf0] }
  0x15   :  { %v812_v2 = vld [vmem:[#allocation5 + $0x24] sm:$0xf]  ;;  %v662_v3 = vor.u32 %v814_v1, %v661_v0  ;;  %v663_v4 = vld [vmem:[#allocation5 + $0x30] sm:$0xf0]  ;;  %v669_v5 = vld [vmem:[#allocation5 + $0x28] sm:$0xf] }
  0x16   :  { %v815_v6 = vld [vmem:[#allocation5 + $0x34] sm:$0xf0]  ;;  %v666_v7 = vor.u32 %v812_v2, %v663_v4  ;;  %v813_v9 = vld [vmem:[#allocation5 + $0x2c] sm:$0xf]  ;;  %v671_v10 = vld [vmem:[#allocation5 + $0x38] sm:$0xf0] }
  0x17   :  { %v670_v8 = vor.u32 %v815_v6, %v669_v5  ;;  %v645_v11 = vld [vmem:[#allocation5] sm:$0xf]  ;;  %158 = vmatpush.bf16.msra.mxu0 %v662_v3  ;;  %v674_v12 = vor.u32 %v813_v9, %v671_v10  ;;  %v810_v13 = vld [vmem:[#allocation5 + $0xc] sm:$0xf0]  ;;  %v808_v14 = vld [vmem:[#allocation5 + $0x4] sm:$0xf] }
  0x18   :  { %v647_v15 = vld [vmem:[#allocation5 + $0x10] sm:$0xf0]  ;;  %172 = vmatpush.bf16.msra.mxu1 %v666_v7  ;;  %v646_v16 = vor.u32 %v810_v13, %v645_v11  ;;  %v653_v18 = vld [vmem:[#allocation5 + $0x8] sm:$0xf]  ;;  %v811_v19 = vld [vmem:[#allocation5 + $0x14] sm:$0xf0] }
  0x19   :  { %186 = vmatpush.bf16.msra.mxu2 %v670_v8  ;;  %v650_v17 = vor.u32 %v808_v14, %v647_v15  ;;  %v809_v20 = vld [vmem:[#allocation5 + $0xc] sm:$0xf]  ;;  %200 = vmatpush.bf16.msra.mxu3 %v674_v12  ;;  %v654_v21 = vor.u32 %v811_v19, %v653_v18  ;;  %v655_v22 = vld [vmem:[#allocation5 + $0x18] sm:$0xf0]  ;;  %vm148_vm0 = vcmask 261120   ;;  %v822_v27 = vld [vmem:[#allocation8 + $0x30] sm:$0xff] }
  0x1a   :  { %v658_v23 = vor.u32 %v809_v20, %v655_v22  ;;  %v807_v24 = vld [vmem:[#allocation2] sm:$0xff]  ;;  %v821_v31 = vld [vmem:[#allocation8 + $0x28] sm:$0xff]  ;;  %v820_v35 = vld [vmem:[#allocation8 + $0x20] sm:$0xff]  ;;  %s1028_s15 = smov [#allocation10]   ;;  %s624_s19 = sshll.u32 %s1138_s5, 4  ;;  %s625_s19 = int_to_ptr.hbm [resolvable:$true] %s624_s19 }
  0x1b   :  { %159 = vmatpush.bf16.msra.mxu0 %v646_v16  ;;  %v823_v25 = vld [vmem:[#allocation8 + $0x38] sm:$0xff]  ;;  %v830_v28 = vld [vmem:[#allocation8 + $0x70] sm:$0xff]  ;;  %v829_v32 = vld [vmem:[#allocation8 + $0x68] sm:$0xff]  ;;  %s622_s16 = sshll.u32 %s1028_s15, 4  ;;  %s1030_s20 = smov 8   ;;  %s623_s16 = int_to_ptr.vmem [resolvable:$true] %s622_s16 }
  0x1c   :  { %173 = vmatpush.bf16.msra.mxu1 %v650_v17  ;;  %v831_v26 = vld [vmem:[#allocation8 + $0x78] sm:$0xff]  ;;  %v838_v33 = vld [vmem:[#allocation8 + $0xb0] sm:$0xff]  ;;  %v828_v36 = vld [vmem:[#allocation8 + $0x60] sm:$0xff] }
  0x1d   :  { %187 = vmatpush.bf16.msra.mxu2 %v654_v21  ;;  %201 = vmatpush.bf16.msra.mxu3 %v658_v23  ;;  %v839_v29 = vld [vmem:[#allocation8 + $0xb8] sm:$0xff]  ;;  %v846_v34 = vld [vmem:[#allocation8 + $0xf0] sm:$0xff]  ;;  %v837_v37 = vld [vmem:[#allocation8 + $0xa8] sm:$0xff] }
  0x1e   :  { %675 = vmatmul.msk.bf16.vlgmr.msra.gmra.mxu0 %vm148_vm0, %v807_v24  ;;  %v847_v30 = vld [vmem:[#allocation8 + $0xf8] sm:$0xff]  ;;  %v845_v38 = vld [vmem:[#allocation8 + $0xe8] sm:$0xff]  ;;  %v836_v43 = vld [vmem:[#allocation8 + $0xa0] sm:$0xff] }
  0x1f   :  { %676 = vmatmul.msk.bf16.vlgmr.msra.gmra.mxu1 %vm148_vm0, %v807_v24  ;;  %560 = vmatpush.bf16.msrb.mxu0 %v823_v25  ;;  %v1073_v39 = vld [vmem:[#allocation7] sm:$0xf]  ;;  %v844_v44 = vld [vmem:[#allocation8 + $0xe0] sm:$0xff]  ;;  %v818_v46 = vld [vmem:[#allocation8 + $0x10] sm:$0xff] }
  0x20   :  { %677 = vmatmul.msk.bf16.vlgmr.msra.gmra.mxu2 %vm148_vm0, %v807_v24  ;;  %678 = vmatmul.msk.bf16.vlgmr.msra.gmra.mxu3 %vm148_vm0, %v807_v24  ;;  %v819_v40 = vld [vmem:[#allocation8 + $0x18] sm:$0xff]  ;;  %v95_v42 = vperm.slane %v1073_v39, 0  ;;  %v96_v45 = vperm.slane %v1073_v39, 1  ;;  %v826_v47 = vld [vmem:[#allocation8 + $0x50] sm:$0xff]  ;;  %v817_v55 = vld [vmem:[#allocation8 + $0x8] sm:$0xff]  ;;  %v97_v58 = vperm.slane %v1073_v39, 2 }
  0x21   :  { %574 = vmatpush.bf16.msrb.mxu1 %v831_v26  ;;  %588 = vmatpush.bf16.msrb.mxu2 %v839_v29  ;;  %v827_v41 = vld [vmem:[#allocation8 + $0x58] sm:$0xff]  ;;  %v825_v56 = vld [vmem:[#allocation8 + $0x48] sm:$0xff]  ;;  %v98_v60 = vperm.slane %v1073_v39, 3  ;;  %v834_v61 = vld [vmem:[#allocation8 + $0x90] sm:$0xff] }
  0x22   :  { %602 = vmatpush.bf16.msrb.mxu3 %v847_v30  ;;  %v835_v51 = vld [vmem:[#allocation8 + $0x98] sm:$0xff]  ;;  %v842_v62 = vld [vmem:[#allocation8 + $0xd0] sm:$0xff]  ;;  %v816_v1 = vld [vmem:[#allocation8] sm:$0xff] }
  0x23   :  { %561 = vmatpush.bf16.msrb.mxu0 %v822_v27  ;;  %v843_v52 = vld [vmem:[#allocation8 + $0xd8] sm:$0xff]  ;;  %v824_v2 = vld [vmem:[#allocation8 + $0x40] sm:$0xff]  ;;  %v833_v9 = vld [vmem:[#allocation8 + $0x88] sm:$0xff] }
  0x24   :  { %v841_v10 = vld [vmem:[#allocation8 + $0xc8] sm:$0xff]  ;;  %v832_v20 = vld [vmem:[#allocation8 + $0x80] sm:$0xff] }
  0x25   :  { %575 = vmatpush.bf16.msrb.mxu1 %v830_v28  ;;  %589 = vmatpush.bf16.msrb.mxu2 %v838_v33  ;;  %v840_v21 = vld [vmem:[#allocation8 + $0xc0] sm:$0xff] }
  0x26   :  { %603 = vmatpush.bf16.msrb.mxu3 %v846_v34 }
  0x27   :  { %562 = vmatpush.bf16.msrb.mxu0 %v821_v31 }
  0x29   :  { %576 = vmatpush.bf16.msrb.mxu1 %v829_v32  ;;  %590 = vmatpush.bf16.msrb.mxu2 %v837_v37 }
  0x2a   :  { %604 = vmatpush.bf16.msrb.mxu3 %v845_v38 }
  0x2b   :  { %563 = vmatpush.bf16.msrb.mxu0 %v820_v35 }
  0x2d   :  { %577 = vmatpush.bf16.msrb.mxu1 %v828_v36  ;;  %591 = vmatpush.bf16.msrb.mxu2 %v836_v43 }
  0x2e   :  { %605 = vmatpush.bf16.msrb.mxu3 %v844_v44 }
  0x2f   :  { %564 = vmatpush.bf16.msrb.mxu0 %v819_v40 }
  0x31   :  { %578 = vmatpush.bf16.msrb.mxu1 %v827_v41  ;;  %592 = vmatpush.bf16.msrb.mxu2 %v835_v51 }
  0x32   :  { %606 = vmatpush.bf16.msrb.mxu3 %v843_v52 }
  0x33   :  { %565 = vmatpush.bf16.msrb.mxu0 %v818_v46 }
  0x35   :  { %579 = vmatpush.bf16.msrb.mxu1 %v826_v47  ;;  %593 = vmatpush.bf16.msrb.mxu2 %v834_v61 }
  0x36   :  { %607 = vmatpush.bf16.msrb.mxu3 %v842_v62 }
  0x37   :  { %566 = vmatpush.bf16.msrb.mxu0 %v817_v55 }
  0x39   :  { %580 = vmatpush.bf16.msrb.mxu1 %v825_v56  ;;  %594 = vmatpush.bf16.msrb.mxu2 %v833_v9 }
  0x3a   :  { %608 = vmatpush.bf16.msrb.mxu3 %v841_v10 }
  0x3b   :  { %567 = vmatpush.bf16.msrb.mxu0 %v816_v1 }
  0x3d   :  { %581 = vmatpush.bf16.msrb.mxu1 %v824_v2  ;;  %595 = vmatpush.bf16.msrb.mxu2 %v832_v20 }
  0x3e   :  { %609 = vmatpush.bf16.msrb.mxu3 %v840_v21 }
  0x9b   :  { %v161_v48 = vpop.f32.mrf.mxu0 }
  0x9c   :  { %v1077_v49 = vadd.f32 %v161_v48, %v95_v42  ;;  %v175_v50 = vpop.f32.mrf.mxu1 }
  0x9d   :  { %v1079_v53 = vadd.f32 %v175_v50, %v96_v45 }
  0x9e   :  { %v208_v54 = vmin.f32 %v1077_v49, 20.0  ;;  %vm272_vm1 = vcmp.gt.f32.partialorder %v1077_v49, 20.0 }
  0x9f   :  { %v209_v57 = vmin.f32 %v1079_v53, 20.0  ;;  %vm273_vm3 = vcmp.gt.f32.partialorder %v1079_v53, 20.0 }
  0xa0   :  { %v216_v59 = vmul.f32 1.442695, %v208_v54 }
  0xa1   :  { %v218_v63 = vmul.f32 1.442695, %v209_v57 }
  0xa2   :  { %860 = vpow2.f32 %v216_v59 }
  0xa3   :  { %v189_v0 = vpop.f32.mrf.mxu2  ;;  %862 = vpow2.f32 %v218_v63  ;;  %v203_v4 = vpop.f32.mrf.mxu3 }
  0xa4   :  { %v1085_v3 = vadd.f32 %v189_v0, %v97_v58  ;;  %v163_v5 = vpop.f32.mrf.mxu0  ;;  %v1087_v6 = vadd.f32 %v203_v4, %v98_v60  ;;  %v177_v8 = vpop.f32.mrf.mxu1 }
  0xa5   :  { %v1089_v7 = vadd.f32 %v163_v5, %v95_v42  ;;  %v1092_v12 = vadd.f32 %v177_v8, %v96_v45 }
  0xa6   :  { %v210_v11 = vmin.f32 %v1085_v3, 20.0  ;;  %v211_v13 = vmin.f32 %v1087_v6, 20.0  ;;  %vm274_vm5 = vcmp.gt.f32.partialorder %v1085_v3, 20.0  ;;  %vm275_vm7 = vcmp.gt.f32.partialorder %v1087_v6, 20.0 }
  0xa7   :  { %v212_v14 = vmin.f32 %v1089_v7, 20.0  ;;  %v213_v16 = vmin.f32 %v1092_v12, 20.0  ;;  %vm276_vm2 = vcmp.gt.f32.partialorder %v1089_v7, 20.0  ;;  %vm277_vm4 = vcmp.gt.f32.partialorder %v1092_v12, 20.0 }
  0xa8   :  { %v220_v15 = vmul.f32 1.442695, %v210_v11  ;;  %v861_v17 = vpop.eup %860  ;;  %v222_v18 = vmul.f32 1.442695, %v211_v13 }
  0xa9   :  { %v224_v19 = vmul.f32 1.442695, %v212_v14  ;;  %v863_v22 = vpop.eup %862  ;;  %v232_v23 = vadd.f32 2.0, %v861_v17  ;;  %v226_v24 = vmul.f32 1.442695, %v213_v16 }
  0xaa   :  { %864 = vpow2.f32 %v220_v15  ;;  %v233_v25 = vadd.f32 2.0, %v863_v22 }
  0xab   :  { %866 = vpow2.f32 %v222_v18  ;;  %v191_v26 = vpop.f32.mrf.mxu2  ;;  %v240_v27 = vmul.f32 %v861_v17, %v232_v23  ;;  %v205_v29 = vpop.f32.mrf.mxu3 }
  0xac   :  { %868 = vpow2.f32 %v224_v19  ;;  %v1097_v28 = vadd.f32 %v191_v26, %v97_v58  ;;  %v241_v30 = vmul.f32 %v863_v22, %v233_v25  ;;  %v1099_v31 = vadd.f32 %v205_v29, %v98_v60 }
  0xad   :  { %870 = vpow2.f32 %v226_v24  ;;  %v248_v32 = vadd.f32 2.0, %v240_v27 }
  0xae   :  { %v214_v33 = vmin.f32 %v1097_v28, 20.0  ;;  %v215_v34 = vmin.f32 %v1099_v31, 20.0  ;;  %v249_v36 = vadd.f32 2.0, %v241_v30  ;;  %vm278_vm6 = vcmp.gt.f32.partialorder %v1097_v28, 20.0 }
  0xaf   :  { %872 = vrcp.f32 %v248_v32  ;;  %vm279_vm8 = vcmp.gt.f32.partialorder %v1099_v31, 20.0 }
  0xb0   :  { %v865_v35 = vpop.eup %864  ;;  %v228_v37 = vmul.f32 1.442695, %v214_v33  ;;  %v230_v40 = vmul.f32 1.442695, %v215_v34 }
  0xb1   :  { %v867_v38 = vpop.eup %866  ;;  %v234_v39 = vadd.f32 2.0, %v865_v35 }
  0xb2   :  { %v869_v41 = vpop.eup %868  ;;  %v235_v42 = vadd.f32 2.0, %v867_v38  ;;  %874 = vpow2.f32 %v228_v37 }
  0xb3   :  { %v871_v43 = vpop.eup %870  ;;  %v242_v44 = vmul.f32 %v865_v35, %v234_v39  ;;  %v236_v45 = vadd.f32 2.0, %v869_v41  ;;  %876 = vpow2.f32 %v230_v40  ;;  %v859_v39 = vld [vmem:[%s1137_s4] ss:$0 sm:$0xff]  ;;  %s1029_s4 = smov 128  }
  0xb4   :  { %878 = vrcp.f32 %v249_v36  ;;  %v243_v46 = vmul.f32 %v867_v38, %v235_v42  ;;  %v237_v47 = vadd.f32 2.0, %v871_v43 }
  0xb5   :  { %v250_v48 = vadd.f32 2.0, %v242_v44  ;;  %v244_v50 = vmul.f32 %v869_v41, %v236_v45  ;;  %v873_v54 = vpop.eup %872 }
  0xb6   :  { %v251_v51 = vadd.f32 2.0, %v243_v46  ;;  %v245_v52 = vmul.f32 %v871_v43, %v237_v47  ;;  %v264_v63 = vmul.f32 %v873_v54, %v240_v27 }
  0xb7   :  { %880 = vrcp.f32 %v250_v48  ;;  %v252_v55 = vadd.f32 2.0, %v244_v50 }
  0xb8   :  { %v875_v56 = vpop.eup %874  ;;  %882 = vrcp.f32 %v251_v51  ;;  %v253_v57 = vadd.f32 2.0, %v245_v52  ;;  %v280_v11 = vmul.f32 %v264_v63, %v1077_v49 }
  0xb9   :  { %v877_v58 = vpop.eup %876  ;;  %884 = vrcp.f32 %v252_v55  ;;  %v238_v59 = vadd.f32 2.0, %v875_v56 }
  0xba   :  { %v879_v60 = vpop.eup %878  ;;  %886 = vrcp.f32 %v253_v57  ;;  %v239_v61 = vadd.f32 2.0, %v877_v58  ;;  %v288_v20 = vsel %vm272_vm1, %v1077_v49, %v280_v11 }
  0xbb   :  { %v246_v62 = vmul.f32 %v875_v56, %v238_v59  ;;  %v265_v2 = vmul.f32 %v879_v60, %v241_v30 }
  0xbc   :  { %v247_v0 = vmul.f32 %v877_v58, %v239_v61 }
  0xbd   :  { %v881_v1 = vpop.eup %880  ;;  %v254_v4 = vadd.f32 2.0, %v246_v62  ;;  %v281_v14 = vmul.f32 %v265_v2, %v1079_v53 }
  0xbe   :  { %v883_v5 = vpop.eup %882  ;;  %v255_v8 = vadd.f32 2.0, %v247_v0  ;;  %v266_v16 = vmul.f32 %v881_v1, %v242_v44 }
  0xbf   :  { %v885_v9 = vpop.eup %884  ;;  %888 = vrcp.f32 %v254_v4  ;;  %v267_v18 = vmul.f32 %v883_v5, %v243_v46  ;;  %v289_v24 = vsel %vm273_vm3, %v1079_v53, %v281_v14 }
  0xc0   :  { %v887_v10 = vpop.eup %886  ;;  %v268_v13 = vmul.f32 %v885_v9, %v244_v50  ;;  %890 = vrcp.f32 %v255_v8  ;;  %v282_v27 = vmul.f32 %v266_v16, %v1085_v3 }
  0xc1   :  { %v269_v15 = vmul.f32 %v887_v10, %v245_v52  ;;  %v283_v32 = vmul.f32 %v267_v18, %v1087_v6 }
  0xc2   :  { %v284_v17 = vmul.f32 %v268_v13, %v1089_v7  ;;  %v290_v53 = vsel %vm274_vm5, %v1085_v3, %v282_v27 }
  0xc3   :  { %v285_v19 = vmul.f32 %v269_v15, %v1092_v12  ;;  %v291_v35 = vsel %vm275_vm7, %v1087_v6, %v283_v32 }
  0xc4   :  { %v292_v21 = vsel %vm276_vm2, %v1089_v7, %v284_v17 }
  0xc5   :  { %v889_v22 = vpop.eup %888  ;;  %v296_v23 = vpack.c.bf16 %v292_v21, %v288_v20  ;;  %v293_v25 = vsel %vm277_vm4, %v1092_v12, %v285_v19 }
  0xc6   :  { %v891_v26 = vpop.eup %890  ;;  %v270_v29 = vmul.f32 %v889_v22, %v246_v62  ;;  %v297_v30 = vpack.c.bf16 %v293_v25, %v289_v24 }
  0xc7   :  { %v271_v49 = vmul.f32 %v891_v26, %v247_v0  ;;  %568 = vmatmul.bf16.vlgmr.msrb.gmra.mxu0 %v296_v23 }
  0xc8   :  { %v286_v7 = vmul.f32 %v270_v29, %v1097_v28  ;;  %582 = vmatmul.bf16.vlgmr.msrb.gmra.mxu1 %v297_v30 }
  0xc9   :  { %v287_v33 = vmul.f32 %v271_v49, %v1099_v31 }
  0xca   :  { %v294_v12 = vsel %vm278_vm6, %v1097_v28, %v286_v7 }
  0xcb   :  { %v298_v34 = vpack.c.bf16 %v294_v12, %v290_v53  ;;  %v295_v36 = vsel %vm279_vm8, %v1099_v31, %v287_v33 }
  0xcc   :  { %v299_v37 = vpack.c.bf16 %v295_v36, %v291_v35 }
  0xcd   :  { %596 = vmatmul.bf16.vlgmr.msrb.gmra.mxu2 %v298_v34 }
  0xce   :  { %610 = vmatmul.bf16.vlgmr.msrb.gmra.mxu3 %v299_v37 }
 0x144   :  { %v569_v38 = vpop.f32.mrf.mxu0 }
 0x145   :  { %v570_v3 = vadd.f32 %v859_v39, %v569_v38  ;;  %v583_v40 = vpop.f32.mrf.mxu1 }
 0x147   :  { %v584_v28 = vadd.f32 %v583_v40, %v570_v3 }
 0x14c   :  { %v571_v41 = vpop.f32.mrf.mxu0 }
 0x14d   :  { %v572_v45 = vadd.f32 %v859_v39, %v571_v41  ;;  %v585_v6 = vpop.f32.mrf.mxu1 }
 0x14f   :  { %v586_v31 = vadd.f32 %v585_v6, %v572_v45 }
 0x150   :  { %v597_v42 = vpop.f32.mrf.mxu2 }
 0x151   :  { %v598_v43 = vadd.f32 %v597_v42, %v584_v28  ;;  %v611_v44 = vpop.f32.mrf.mxu3 }
 0x153   :  { %v612_v46 = vadd.f32 %v611_v44, %v598_v43 }
 0x155   :  { %616 = vst [vmem:[#allocation10] sm:$0xff] %v612_v46 }
 0x158   :  { %v599_v47 = vpop.f32.mrf.mxu2 }
 0x159   :  { %v600_v48 = vadd.f32 %v599_v47, %v586_v31  ;;  %v613_v50 = vpop.f32.mrf.mxu3 }
 0x15b   :  { %v614_v51 = vadd.f32 %v613_v50, %v600_v48 }
 0x15d   :  { %617 = vst [vmem:[#allocation10 + $0x8] sm:$0xff] %v614_v51 }
 0x15e   :  { %630 = dma.vmem_to_hbm [thread:$0]  %s623_s16, 256, %s625_s19, [#allocation4], %s1029_s4, %s1029_s4, %s1030_s20  }
 0x15f   :  { %1018 = dma.done.wait [#allocation4], 256  }
 0x160   :  { %1019 = vsyncadd [#allocation4], 4294967040 }
 0x161   :  { %635 = vsyncpa [#allocation3], 1 }
 0x162   :  { %636 = vsyncpa [#allocation6], 1 }
 0x163   :  { %637 = vsyncpa [#allocation9], 1 }
 0x164   :  { %638 = vsyncpa [#allocation4], 1 }

// kernel: tpu_custom_call.1
= control target key start
LH: loop header
LB: loop body
LE: loop exit
PB: predicated region body
PF: predicated region fallthrough
CT: control target
= control target key end

     0   :  { %10 = vsyncpa [#allocation3], 0  ;;  %s1133_s0 = inlined_call_operand.hbm [shape: bf16[16,32], index: 0, kind: input, shape index: {}]   ;;  %s1134_s1 = inlined_call_operand.hbm [shape: bf16[32,512], index: 1, kind: input, shape index: {}]   ;;  %s1135_s2 = inlined_call_operand.hbm [shape: f32[1,512], index: 2, kind: input, shape index: {}]   ;;  %s1136_s3 = inlined_call_operand.hbm [shape: bf16[512,128], index: 3, kind: input, shape index: {}]   ;;  %s1137_s4 = inlined_call_operand.vmem [shape: f32[1,128], index: 4, kind: input, shape index: {}]   ;;  %s1138_s5 = inlined_call_operand.hbm [shape: f32[16,128], index: 5, kind: output, shape index: {}]  }
   0x1   :  { %11 = vsyncpa [#allocation6], 0 }
   0x2   :  { %12 = vsyncpa [#allocation9], 0  ;;  %s31_s20 = sshll.u32 %s1134_s1, 4  ;;  %s32_s20 = int_to_ptr.hbm [resolvable:$true] %s31_s20 }
   0x3   :  { %13 = vsyncpa [#allocation4], 0  ;;  %s1020_s21 = smov [#allocation5]   ;;  %s18_s25 = sshll.u32 %s1133_s0, 4  ;;  %s19_s25 = int_to_ptr.hbm [resolvable:$true] %s18_s25 }
   0x4   :  { %s33_s22 = sshll.u32 %s1020_s21, 4  ;;  %s1021_s26 = smov 256   ;;  %s34_s22 = int_to_ptr.vmem [resolvable:$true] %s33_s22 }
   0x5   :  { %s1022_s27 = smov 16   ;;  %s1023_s28 = smov [#allocation2]  }
   0x6   :  { %39 = dma.hbm_to_vmem [thread:$0]  %s32_s20, 1024, %s34_s22, [#allocation6], %s1021_s26, %s1021_s26, %s1022_s27  }
   0x7   :  { %s20_s29 = sshll.u32 %s1023_s28, 4  ;;  %s1024_s30 = smov 64   ;;  %s21_s29 = int_to_ptr.vmem [resolvable:$true] %s20_s29 }
   0x8   :  { %s1025_s6 = smov 4   ;;  %s45_s8 = sshll.u32 %s1135_s2, 4  ;;  %s46_s8 = int_to_ptr.hbm [resolvable:$true] %s45_s8 }
   0x9   :  { %26 = dma.hbm_to_vmem [thread:$0]  %s19_s25, 128, %s21_s29, [#allocation3], %s1024_s30, %s1024_s30, %s1025_s6  }
   0xa   :  { %s1026_s9 = smov [#allocation7]   ;;  %s55_s12 = sshll.u32 %s1136_s3, 4  ;;  %s56_s12 = int_to_ptr.hbm [resolvable:$true] %s55_s12 }
   0xb   :  { %s47_s10 = sshll.u32 %s1026_s9, 4  ;;  %s1027_s13 = smov [#allocation8]   ;;  %s48_s10 = int_to_ptr.vmem [resolvable:$true] %s47_s10 }
   0xc   :  { %50 = dma.hbm_to_vmem [thread:$0]  %s46_s8, 64, %s48_s10, [#allocation6]  }
   0xd   :  { %s57_s14 = sshll.u32 %s1027_s13, 4  ;;  %s58_s14 = int_to_ptr.vmem [resolvable:$true] %s57_s14 }
   0xe   :  { %63 = dma.hbm_to_vmem [thread:$0]  %s56_s12, 4096, %s58_s14, [#allocation9], %s1024_s30, %s1024_s30, %s1025_s6  }
   0xf   :  { %1012 = dma.done.wait [#allocation3], 128  }
  0x10   :  { %1013 = vsyncadd [#allocation3], 4294967168 }
  0x11   :  { %1014 = dma.done.wait [#allocation6], 1088  }
  0x12   :  { %1015 = vsyncadd [#allocation6], 4294966208 }
  0x13   :  { %1016 = dma.done.wait [#allocation9], 4096  }
  0x14   :  { %1017 = vsyncadd [#allocation9], 4294963200  ;;  %v661_v0 = vld [vmem:[#allocation5 + $0x20] sm:$0xf]  ;;  %v814_v1 = vld [vmem:[#allocation5 + $0x2c] sm:$0xf0] }
  0x15   :  { %v812_v2 = vld [vmem:[#allocation5 + $0x24] sm:$0xf]  ;;  %v662_v3 = vor.u32 %v814_v1, %v661_v0  ;;  %v663_v4 = vld [vmem:[#allocation5 + $0x30] sm:$0xf0]  ;;  %v669_v5 = vld [vmem:[#allocation5 + $0x28] sm:$0xf] }
  0x16   :  { %v815_v6 = vld [vmem:[#allocation5 + $0x34] sm:$0xf0]  ;;  %v666_v7 = vor.u32 %v812_v2, %v663_v4  ;;  %v813_v9 = vld [vmem:[#allocation5 + $0x2c] sm:$0xf]  ;;  %v671_v10 = vld [vmem:[#allocation5 + $0x38] sm:$0xf0] }
  0x17   :  { %v670_v8 = vor.u32 %v815_v6, %v669_v5  ;;  %v645_v11 = vld [vmem:[#allocation5] sm:$0xf]  ;;  %158 = vmatpush.bf16.msra.mxu0 %v662_v3  ;;  %v674_v12 = vor.u32 %v813_v9, %v671_v10  ;;  %v810_v13 = vld [vmem:[#allocation5 + $0xc] sm:$0xf0]  ;;  %v808_v14 = vld [vmem:[#allocation5 + $0x4] sm:$0xf] }
  0x18   :  { %v647_v15 = vld [vmem:[#allocation5 + $0x10] sm:$0xf0]  ;;  %172 = vmatpush.bf16.msra.mxu1 %v666_v7  ;;  %v646_v16 = vor.u32 %v810_v13, %v645_v11  ;;  %v653_v18 = vld [vmem:[#allocation5 + $0x8] sm:$0xf]  ;;  %v811_v19 = vld [vmem:[#allocation5 + $0x14] sm:$0xf0] }
  0x19   :  { %186 = vmatpush.bf16.msra.mxu2 %v670_v8  ;;  %v650_v17 = vor.u32 %v808_v14, %v647_v15  ;;  %v809_v20 = vld [vmem:[#allocation5 + $0xc] sm:$0xf]  ;;  %200 = vmatpush.bf16.msra.mxu3 %v674_v12  ;;  %v654_v21 = vor.u32 %v811_v19, %v653_v18  ;;  %v655_v22 = vld [vmem:[#allocation5 + $0x18] sm:$0xf0]  ;;  %vm148_vm0 = vcmask 261120   ;;  %v822_v27 = vld [vmem:[#allocation8 + $0x30] sm:$0xff] }
  0x1a   :  { %v658_v23 = vor.u32 %v809_v20, %v655_v22  ;;  %v807_v24 = vld [vmem:[#allocation2] sm:$0xff]  ;;  %v821_v31 = vld [vmem:[#allocation8 + $0x28] sm:$0xff]  ;;  %v820_v35 = vld [vmem:[#allocation8 + $0x20] sm:$0xff]  ;;  %s1028_s15 = smov [#allocation10]   ;;  %s624_s19 = sshll.u32 %s1138_s5, 4  ;;  %s625_s19 = int_to_ptr.hbm [resolvable:$true] %s624_s19 }
  0x1b   :  { %159 = vmatpush.bf16.msra.mxu0 %v646_v16  ;;  %v823_v25 = vld [vmem:[#allocation8 + $0x38] sm:$0xff]  ;;  %v830_v28 = vld [vmem:[#allocation8 + $0x70] sm:$0xff]  ;;  %v829_v32 = vld [vmem:[#allocation8 + $0x68] sm:$0xff]  ;;  %s622_s16 = sshll.u32 %s1028_s15, 4  ;;  %s1030_s20 = smov 8   ;;  %s623_s16 = int_to_ptr.vmem [resolvable:$true] %s622_s16 }
  0x1c   :  { %173 = vmatpush.bf16.msra.mxu1 %v650_v17  ;;  %v831_v26 = vld [vmem:[#allocation8 + $0x78] sm:$0xff]  ;;  %v838_v33 = vld [vmem:[#allocation8 + $0xb0] sm:$0xff]  ;;  %v828_v36 = vld [vmem:[#allocation8 + $0x60] sm:$0xff] }
  0x1d   :  { %187 = vmatpush.bf16.msra.mxu2 %v654_v21  ;;  %201 = vmatpush.bf16.msra.mxu3 %v658_v23  ;;  %v839_v29 = vld [vmem:[#allocation8 + $0xb8] sm:$0xff]  ;;  %v846_v34 = vld [vmem:[#allocation8 + $0xf0] sm:$0xff]  ;;  %v837_v37 = vld [vmem:[#allocation8 + $0xa8] sm:$0xff] }
  0x1e   :  { %675 = vmatmul.msk.bf16.vlgmr.msra.gmra.mxu0 %vm148_vm0, %v807_v24  ;;  %v847_v30 = vld [vmem:[#allocation8 + $0xf8] sm:$0xff]  ;;  %v845_v38 = vld [vmem:[#allocation8 + $0xe8] sm:$0xff]  ;;  %v836_v43 = vld [vmem:[#allocation8 + $0xa0] sm:$0xff] }
  0x1f   :  { %676 = vmatmul.msk.bf16.vlgmr.msra.gmra.mxu1 %vm148_vm0, %v807_v24  ;;  %560 = vmatpush.bf16.msrb.mxu0 %v823_v25  ;;  %v1073_v39 = vld [vmem:[#allocation7] sm:$0xf]  ;;  %v844_v44 = vld [vmem:[#allocation8 + $0xe0] sm:$0xff]  ;;  %v818_v46 = vld [vmem:[#allocation8 + $0x10] sm:$0xff] }
  0x20   :  { %677 = vmatmul.msk.bf16.vlgmr.msra.gmra.mxu2 %vm148_vm0, %v807_v24  ;;  %678 = vmatmul.msk.bf16.vlgmr.msra.gmra.mxu3 %vm148_vm0, %v807_v24  ;;  %v819_v40 = vld [vmem:[#allocation8 + $0x18] sm:$0xff]  ;;  %v95_v42 = vperm.slane %v1073_v39, 0  ;;  %v96_v45 = vperm.slane %v1073_v39, 1  ;;  %v826_v47 = vld [vmem:[#allocation8 + $0x50] sm:$0xff]  ;;  %v817_v55 = vld [vmem:[#allocation8 + $0x8] sm:$0xff]  ;;  %v97_v58 = vperm.slane %v1073_v39, 2 }
  0x21   :  { %574 = vmatpush.bf16.msrb.mxu1 %v831_v26  ;;  %588 = vmatpush.bf16.msrb.mxu2 %v839_v29  ;;  %v827_v41 = vld [vmem:[#allocation8 + $0x58] sm:$0xff]  ;;  %v825_v56 = vld [vmem:[#allocation8 + $0x48] sm:$0xff]  ;;  %v98_v60 = vperm.slane %v1073_v39, 3  ;;  %v834_v61 = vld [vmem:[#allocation8 + $0x90] sm:$0xff] }
  0x22   :  { %602 = vmatpush.bf16.msrb.mxu3 %v847_v30  ;;  %v835_v51 = vld [vmem:[#allocation8 + $0x98] sm:$0xff]  ;;  %v842_v62 = vld [vmem:[#allocation8 + $0xd0] sm:$0xff]  ;;  %v816_v1 = vld [vmem:[#allocation8] sm:$0xff] }
  0x23   :  { %561 = vmatpush.bf16.msrb.mxu0 %v822_v27  ;;  %v843_v52 = vld [vmem:[#allocation8 + $0xd8] sm:$0xff]  ;;  %v824_v2 = vld [vmem:[#allocation8 + $0x40] sm:$0xff]  ;;  %v833_v9 = vld [vmem:[#allocation8 + $0x88] sm:$0xff] }
  0x24   :  { %v841_v10 = vld [vmem:[#allocation8 + $0xc8] sm:$0xff]  ;;  %v832_v20 = vld [vmem:[#allocation8 + $0x80] sm:$0xff] }
  0x25   :  { %575 = vmatpush.bf16.msrb.mxu1 %v830_v28  ;;  %589 = vmatpush.bf16.msrb.mxu2 %v838_v33  ;;  %v840_v21 = vld [vmem:[#allocation8 + $0xc0] sm:$0xff] }
  0x26   :  { %603 = vmatpush.bf16.msrb.mxu3 %v846_v34 }
  0x27   :  { %562 = vmatpush.bf16.msrb.mxu0 %v821_v31 }
  0x29   :  { %576 = vmatpush.bf16.msrb.mxu1 %v829_v32  ;;  %590 = vmatpush.bf16.msrb.mxu2 %v837_v37 }
  0x2a   :  { %604 = vmatpush.bf16.msrb.mxu3 %v845_v38 }
  0x2b   :  { %563 = vmatpush.bf16.msrb.mxu0 %v820_v35 }
  0x2d   :  { %577 = vmatpush.bf16.msrb.mxu1 %v828_v36  ;;  %591 = vmatpush.bf16.msrb.mxu2 %v836_v43 }
  0x2e   :  { %605 = vmatpush.bf16.msrb.mxu3 %v844_v44 }
  0x2f   :  { %564 = vmatpush.bf16.msrb.mxu0 %v819_v40 }
  0x31   :  { %578 = vmatpush.bf16.msrb.mxu1 %v827_v41  ;;  %592 = vmatpush.bf16.msrb.mxu2 %v835_v51 }
  0x32   :  { %606 = vmatpush.bf16.msrb.mxu3 %v843_v52 }
  0x33   :  { %565 = vmatpush.bf16.msrb.mxu0 %v818_v46 }
  0x35   :  { %579 = vmatpush.bf16.msrb.mxu1 %v826_v47  ;;  %593 = vmatpush.bf16.msrb.mxu2 %v834_v61 }
  0x36   :  { %607 = vmatpush.bf16.msrb.mxu3 %v842_v62 }
  0x37   :  { %566 = vmatpush.bf16.msrb.mxu0 %v817_v55 }
  0x39   :  { %580 = vmatpush.bf16.msrb.mxu1 %v825_v56  ;;  %594 = vmatpush.bf16.msrb.mxu2 %v833_v9 }
  0x3a   :  { %608 = vmatpush.bf16.msrb.mxu3 %v841_v10 }
  0x3b   :  { %567 = vmatpush.bf16.msrb.mxu0 %v816_v1 }
  0x3d   :  { %581 = vmatpush.bf16.msrb.mxu1 %v824_v2  ;;  %595 = vmatpush.bf16.msrb.mxu2 %v832_v20 }
  0x3e   :  { %609 = vmatpush.bf16.msrb.mxu3 %v840_v21 }
  0x9b   :  { %v161_v48 = vpop.f32.mrf.mxu0 }
  0x9c   :  { %v1077_v49 = vadd.f32 %v161_v48, %v95_v42  ;;  %v175_v50 = vpop.f32.mrf.mxu1 }
  0x9d   :  { %v1079_v53 = vadd.f32 %v175_v50, %v96_v45 }
  0x9e   :  { %v208_v54 = vmin.f32 %v1077_v49, 20.0  ;;  %vm272_vm1 = vcmp.gt.f32.partialorder %v1077_v49, 20.0 }
  0x9f   :  { %v209_v57 = vmin.f32 %v1079_v53, 20.0  ;;  %vm273_vm3 = vcmp.gt.f32.partialorder %v1079_v53, 20.0 }
  0xa0   :  { %v216_v59 = vmul.f32 1.442695, %v208_v54 }
  0xa1   :  { %v218_v63 = vmul.f32 1.442695, %v209_v57 }
  0xa2   :  { %860 = vpow2.f32 %v216_v59 }
  0xa3   :  { %v189_v0 = vpop.f32.mrf.mxu2  ;;  %862 = vpow2.f32 %v218_v63  ;;  %v203_v4 = vpop.f32.mrf.mxu3 }
  0xa4   :  { %v1085_v3 = vadd.f32 %v189_v0, %v97_v58  ;;  %v163_v5 = vpop.f32.mrf.mxu0  ;;  %v1087_v6 = vadd.f32 %v203_v4, %v98_v60  ;;  %v177_v8 = vpop.f32.mrf.mxu1 }
  0xa5   :  { %v1089_v7 = vadd.f32 %v163_v5, %v95_v42  ;;  %v1092_v12 = vadd.f32 %v177_v8, %v96_v45 }
  0xa6   :  { %v210_v11 = vmin.f32 %v1085_v3, 20.0  ;;  %v211_v13 = vmin.f32 %v1087_v6, 20.0  ;;  %vm274_vm5 = vcmp.gt.f32.partialorder %v1085_v3, 20.0  ;;  %vm275_vm7 = vcmp.gt.f32.partialorder %v1087_v6, 20.0 }
  0xa7   :  { %v212_v14 = vmin.f32 %v1089_v7, 20.0  ;;  %v213_v16 = vmin.f32 %v1092_v12, 20.0  ;;  %vm276_vm2 = vcmp.gt.f32.partialorder %v1089_v7, 20.0  ;;  %vm277_vm4 = vcmp.gt.f32.partialorder %v1092_v12, 20.0 }
  0xa8   :  { %v220_v15 = vmul.f32 1.442695, %v210_v11  ;;  %v861_v17 = vpop.eup %860  ;;  %v222_v18 = vmul.f32 1.442695, %v211_v13 }
  0xa9   :  { %v224_v19 = vmul.f32 1.442695, %v212_v14  ;;  %v863_v22 = vpop.eup %862  ;;  %v232_v23 = vadd.f32 2.0, %v861_v17  ;;  %v226_v24 = vmul.f32 1.442695, %v213_v16 }
  0xaa   :  { %864 = vpow2.f32 %v220_v15  ;;  %v233_v25 = vadd.f32 2.0, %v863_v22 }
  0xab   :  { %866 = vpow2.f32 %v222_v18  ;;  %v191_v26 = vpop.f32.mrf.mxu2  ;;  %v240_v27 = vmul.f32 %v861_v17, %v232_v23  ;;  %v205_v29 = vpop.f32.mrf.mxu3 }
  0xac   :  { %868 = vpow2.f32 %v224_v19  ;;  %v1097_v28 = vadd.f32 %v191_v26, %v97_v58  ;;  %v241_v30 = vmul.f32 %v863_v22, %v233_v25  ;;  %v1099_v31 = vadd.f32 %v205_v29, %v98_v60 }
  0xad   :  { %870 = vpow2.f32 %v226_v24  ;;  %v248_v32 = vadd.f32 2.0, %v240_v27 }
  0xae   :  { %v214_v33 = vmin.f32 %v1097_v28, 20.0  ;;  %v215_v34 = vmin.f32 %v1099_v31, 20.0  ;;  %v249_v36 = vadd.f32 2.0, %v241_v30  ;;  %vm278_vm6 = vcmp.gt.f32.partialorder %v1097_v28, 20.0 }
  0xaf   :  { %872 = vrcp.f32 %v248_v32  ;;  %vm279_vm8 = vcmp.gt.f32.partialorder %v1099_v31, 20.0 }
  0xb0   :  { %v865_v35 = vpop.eup %864  ;;  %v228_v37 = vmul.f32 1.442695, %v214_v33  ;;  %v230_v40 = vmul.f32 1.442695, %v215_v34 }
  0xb1   :  { %v867_v38 = vpop.eup %866  ;;  %v234_v39 = vadd.f32 2.0, %v865_v35 }
  0xb2   :  { %v869_v41 = vpop.eup %868  ;;  %v235_v42 = vadd.f32 2.0, %v867_v38  ;;  %874 = vpow2.f32 %v228_v37 }
  0xb3   :  { %v871_v43 = vpop.eup %870  ;;  %v242_v44 = vmul.f32 %v865_v35, %v234_v39  ;;  %v236_v45 = vadd.f32 2.0, %v869_v41  ;;  %876 = vpow2.f32 %v230_v40  ;;  %v859_v39 = vld [vmem:[%s1137_s4] ss:$0 sm:$0xff]  ;;  %s1029_s4 = smov 128  }
  0xb4   :  { %878 = vrcp.f32 %v249_v36  ;;  %v243_v46 = vmul.f32 %v867_v38, %v235_v42  ;;  %v237_v47 = vadd.f32 2.0, %v871_v43 }
  0xb5   :  { %v250_v48 = vadd.f32 2.0, %v242_v44  ;;  %v244_v50 = vmul.f32 %v869_v41, %v236_v45  ;;  %v873_v54 = vpop.eup %872 }
  0xb6   :  { %v251_v51 = vadd.f32 2.0, %v243_v46  ;;  %v245_v52 = vmul.f32 %v871_v43, %v237_v47  ;;  %v264_v63 = vmul.f32 %v873_v54, %v240_v27 }
  0xb7   :  { %880 = vrcp.f32 %v250_v48  ;;  %v252_v55 = vadd.f32 2.0, %v244_v50 }
  0xb8   :  { %v875_v56 = vpop.eup %874  ;;  %882 = vrcp.f32 %v251_v51  ;;  %v253_v57 = vadd.f32 2.0, %v245_v52  ;;  %v280_v11 = vmul.f32 %v264_v63, %v1077_v49 }
  0xb9   :  { %v877_v58 = vpop.eup %876  ;;  %884 = vrcp.f32 %v252_v55  ;;  %v238_v59 = vadd.f32 2.0, %v875_v56 }
  0xba   :  { %v879_v60 = vpop.eup %878  ;;  %886 = vrcp.f32 %v253_v57  ;;  %v239_v61 = vadd.f32 2.0, %v877_v58  ;;  %v288_v20 = vsel %vm272_vm1, %v1077_v49, %v280_v11 }
  0xbb   :  { %v246_v62 = vmul.f32 %v875_v56, %v238_v59  ;;  %v265_v2 = vmul.f32 %v879_v60, %v241_v30 }
  0xbc   :  { %v247_v0 = vmul.f32 %v877_v58, %v239_v61 }
  0xbd   :  { %v881_v1 = vpop.eup %880  ;;  %v254_v4 = vadd.f32 2.0, %v246_v62  ;;  %v281_v14 = vmul.f32 %v265_v2, %v1079_v53 }
  0xbe   :  { %v883_v5 = vpop.eup %882  ;;  %v255_v8 = vadd.f32 2.0, %v247_v0  ;;  %v266_v16 = vmul.f32 %v881_v1, %v242_v44 }
  0xbf   :  { %v885_v9 = vpop.eup %884  ;;  %888 = vrcp.f32 %v254_v4  ;;  %v267_v18 = vmul.f32 %v883_v5, %v243_v46  ;;  %v289_v24 = vsel %vm273_vm3, %v1079_v53, %v281_v14 }
  0xc0   :  { %v887_v10 = vpop.eup %886  ;;  %v268_v13 = vmul.f32 %v885_v9, %v244_v50  ;;  %890 = vrcp.f32 %v255_v8  ;;  %v282_v27 = vmul.f32 %v266_v16, %v1085_v3 }
  0xc1   :  { %v269_v15 = vmul.f32 %v887_v10, %v245_v52  ;;  %v283_v32 = vmul.f32 %v267_v18, %v1087_v6 }
  0xc2   :  { %v284_v17 = vmul.f32 %v268_v13, %v1089_v7  ;;  %v290_v53 = vsel %vm274_vm5, %v1085_v3, %v282_v27 }
  0xc3   :  { %v285_v19 = vmul.f32 %v269_v15, %v1092_v12  ;;  %v291_v35 = vsel %vm275_vm7, %v1087_v6, %v283_v32 }
  0xc4   :  { %v292_v21 = vsel %vm276_vm2, %v1089_v7, %v284_v17 }
  0xc5   :  { %v889_v22 = vpop.eup %888  ;;  %v296_v23 = vpack.c.bf16 %v292_v21, %v288_v20  ;;  %v293_v25 = vsel %vm277_vm4, %v1092_v12, %v285_v19 }
  0xc6   :  { %v891_v26 = vpop.eup %890  ;;  %v270_v29 = vmul.f32 %v889_v22, %v246_v62  ;;  %v297_v30 = vpack.c.bf16 %v293_v25, %v289_v24 }
  0xc7   :  { %v271_v49 = vmul.f32 %v891_v26, %v247_v0  ;;  %568 = vmatmul.bf16.vlgmr.msrb.gmra.mxu0 %v296_v23 }
  0xc8   :  { %v286_v7 = vmul.f32 %v270_v29, %v1097_v28  ;;  %582 = vmatmul.bf16.vlgmr.msrb.gmra.mxu1 %v297_v30 }
  0xc9   :  { %v287_v33 = vmul.f32 %v271_v49, %v1099_v31 }
  0xca   :  { %v294_v12 = vsel %vm278_vm6, %v1097_v28, %v286_v7 }
  0xcb   :  { %v298_v34 = vpack.c.bf16 %v294_v12, %v290_v53  ;;  %v295_v36 = vsel %vm279_vm8, %v1099_v31, %v287_v33 }
  0xcc   :  { %v299_v37 = vpack.c.bf16 %v295_v36, %v291_v35 }
  0xcd   :  { %596 = vmatmul.bf16.vlgmr.msrb.gmra.mxu2 %v298_v34 }
  0xce   :  { %610 = vmatmul.bf16.vlgmr.msrb.gmra.mxu3 %v299_v37 }
 0x144   :  { %v569_v38 = vpop.f32.mrf.mxu0 }
 0x145   :  { %v570_v3 = vadd.f32 %v859_v39, %v569_v38  ;;  %v583_v40 = vpop.f32.mrf.mxu1 }
 0x147   :  { %v584_v28 = vadd.f32 %v583_v40, %v570_v3 }
 0x14c   :  { %v571_v41 = vpop.f32.mrf.mxu0 }
 0x14d   :  { %v572_v45 = vadd.f32 %v859_v39, %v571_v41  ;;  %v585_v6 = vpop.f32.mrf.mxu1 }
 0x14f   :  { %v586_v31 = vadd.f32 %v585_v6, %v572_v45 }
 0x150   :  { %v597_v42 = vpop.f32.mrf.mxu2 }
 0x151   :  { %v598_v43 = vadd.f32 %v597_v42, %v584_v28  ;;  %v611_v44 = vpop.f32.mrf.mxu3 }
 0x153   :  { %v612_v46 = vadd.f32 %v611_v44, %v598_v43 }
 0x155   :  { %616 = vst [vmem:[#allocation10] sm:$0xff] %v612_v46 }
 0x158   :  { %v599_v47 = vpop.f32.mrf.mxu2 }
 0x159   :  { %v600_v48 = vadd.f32 %v599_v47, %v586_v31  ;;  %v613_v50 = vpop.f32.mrf.mxu3 }
 0x15b   :  { %v614_v51 = vadd.f32 %v613_v50, %v600_v48 }
 0x15d   :  { %617 = vst [vmem:[#allocation10 + $0x8] sm:$0xff] %v614_v51 }
 0x15e   :  { %630 = dma.vmem_to_hbm [thread:$0]  %s623_s16, 256, %s625_s19, [#allocation4], %s1029_s4, %s1029_s4, %s1030_s20  }
 0x15f   :  { %1018 = dma.done.wait [#allocation4], 256  }
 0x160   :  { %1019 = vsyncadd [#allocation4], 4294967040 }
 0x161   :  { %635 = vsyncpa [#allocation3], 1 }
 0x162   :  { %636 = vsyncpa [#allocation6], 1 }
 0x163   :  { %637 = vsyncpa [#allocation9], 1 }
 0x164   :  { %638 = vsyncpa [#allocation4], 1 }

</bundles_post_ra>
